<compile_context>
chip_gen: v7x
topology: tpu7x:2x2x1
jax: 0.10.0
libtpu: 0.0.40
codegen_flags: <defaults>
</compile_context>

<pallas_src>
import math
from functools import partial

import jax
import jax.numpy as jnp
from jax import lax
from jax.experimental import pallas as pl
from jax.experimental.pallas import tpu as pltpu


def biattention_kernel(x_ref, mem_ref, bias_ref,
                       w_in_ref, w_mem_ref, scale_ref,
                       o_ref, *, input_size):
    D = input_size
    x = x_ref[0]              # (Li, D)
    mem = mem_ref[0]          # (Lm, D)
    bias = bias_ref[0]        # (1, Lm)  additive mask bias: -1e30 * (1 - mask)
    w_in = w_in_ref[...]      # (1, D)
    w_mem = w_mem_ref[...]    # (1, D)
    scale = scale_ref[...]    # (1, D)   dot_scale

    # Contract the last dim of both operands (implicit trans_b) -> no explicit transposes.
    dn_last = (((1,), (1,)), ((), ()))

    # cross_dot  = (x * dot_scale) @ mem^T                       (Li, Lm)
    cross = lax.dot_general(x * scale, mem, dn_last,
                            preferred_element_type=jnp.float32)
    # input_dot  = x @ w_in^T                                    (Li, 1)
    input_dot = lax.dot_general(x, w_in, dn_last,
                                preferred_element_type=jnp.float32)
    # memory_dot = w_mem @ mem^T                                 (1, Lm)
    memory_dot = lax.dot_general(w_mem, mem, dn_last,
                                 preferred_element_type=jnp.float32)

    att = cross + input_dot + memory_dot + bias                  # (Li, Lm)

    # weight_one = softmax(att, axis=-1); output_one = weight_one @ memory
    row_max = jnp.max(att, axis=-1, keepdims=True)               # (Li, 1)
    e1 = jnp.exp(att - row_max)
    w1 = e1 * pl.reciprocal(jnp.sum(e1, axis=-1, keepdims=True), approx=False)
    out1 = jnp.dot(w1, mem, preferred_element_type=jnp.float32)  # (Li, D)

    # weight_two = softmax(att.max(-1), axis over Li); output_two = weight_two @ input
    col_max = jnp.max(row_max, axis=0, keepdims=True)            # (1, 1)
    e2 = jnp.exp(row_max - col_max)                              # (Li, 1)
    w2 = e2 * pl.reciprocal(jnp.sum(e2, axis=0, keepdims=True), approx=False)
    out2 = jnp.sum(w2 * x, axis=0, keepdims=True)                # (1, D)

    # Lane-aligned stores of the 4 D-wide chunks (avoids a lane-axis concat relayout).
    o_ref[0, :, 0:D] = x
    o_ref[0, :, D:2 * D] = out1
    o_ref[0, :, 2 * D:3 * D] = x * out1
    o_ref[0, :, 3 * D:4 * D] = out2 * out1


def bi_attention(x, memory, mask, params):
    B, Li, D = x.shape
    _, Lm, _ = memory.shape

    # Hoist the mask work out of the kernel: additive bias, shape (B, 1, Lm).
    bias = (-1e30 * (1.0 - mask)).reshape(B, 1, Lm).astype(jnp.float32)

    def const2d(shape):
        return pl.BlockSpec(shape, lambda b: (0, 0))

    return pl.pallas_call(
        partial(biattention_kernel, input_size=D),
        out_shape=jax.ShapeDtypeStruct((B, Li, 4 * D), jnp.float32),
        grid=(B,),
        in_specs=[
            pl.BlockSpec((1, Li, D), lambda b: (b, 0, 0)),   # input
            pl.BlockSpec((1, Lm, D), lambda b: (b, 0, 0)),   # memory
            pl.BlockSpec((1, 1, Lm), lambda b: (b, 0, 0)),   # additive mask bias
            const2d((1, D)),                                 # input_linear weight (row)
            const2d((1, D)),                                 # memory_linear weight (row)
            const2d((1, D)),                                 # dot_scale
        ],
        out_specs=pl.BlockSpec((1, Li, 4 * D), lambda b: (b, 0, 0)),
        compiler_params=pltpu.CompilerParams(
            dimension_semantics=("parallel",)),
    )(x, memory, bias, params["w_in"], params["w_mem"], params["scale"])


def reference(x, memory, mask, params):
    """Pure-JAX reference matching the PyTorch forward (dropout = identity)."""
    B, Li, D = x.shape
    _, Lm, _ = memory.shape
    input_dot = x @ params["w_in"].T                                  # (B, Li, 1)
    memory_dot = (memory @ params["w_mem"].T).reshape(B, 1, Lm)       # (B, 1, Lm)
    cross = jnp.einsum("bid,bjd->bij", x * params["scale"], memory)   # (B, Li, Lm)
    att = input_dot + memory_dot + cross
    att = att - 1e30 * (1.0 - mask[:, None, :])
    w1 = jax.nn.softmax(att, axis=-1)
    out1 = jnp.einsum("bij,bjd->bid", w1, memory)                     # (B, Li, D)
    w2 = jax.nn.softmax(jnp.max(att, axis=-1), axis=-1)[:, None, :]   # (B, 1, Li)
    out2 = jnp.einsum("bij,bjd->bid", w2, x)                          # (B, 1, D)
    return jnp.concatenate([x, out1, x * out1, out2 * out1], axis=-1)


def make_params(key, D):
    k0, k1, k2 = jax.random.split(key, 3)
    return {
        "w_in": 0.1 * jax.random.normal(k0, (1, D), jnp.float32),   # Linear(D, 1, bias=False)
        "w_mem": 0.1 * jax.random.normal(k1, (1, D), jnp.float32),  # Linear(D, 1, bias=False)
        "scale": jax.random.uniform(k2, (1, D), jnp.float32,
                                    minval=0.0, maxval=1.0 / math.sqrt(D)),
    }


if __name__ == "__main__":
    B, Li, Lm, D = 2, 16, 32, 128   # small, lane-aligned (D multiple of 128)

    key = jax.random.PRNGKey(0)
    k_x, k_m, k_p = jax.random.split(key, 3)
    x = jax.random.normal(k_x, (B, Li, D), jnp.float32)
    memory = jax.random.normal(k_m, (B, Lm, D), jnp.float32)

    # second batch element has 8 padded memory positions
    lengths = jnp.array([Lm, Lm - 8])
    pos = jnp.arange(Lm)[None, :]
    mask = (pos < lengths[:, None]).astype(jnp.float32)            # (B, Lm), 1 = valid

    params = make_params(k_p, D)

    out = bi_attention(x, memory, mask, params)
    out = jax.block_until_ready(out)

    ref = reference(x, memory, mask, params)
    err = float(jnp.max(jnp.abs(out - ref)))
    assert jnp.allclose(out, ref, atol=1e-4, rtol=1e-4), err

    print("KERNEL_OK")
</pallas_src>

<mosaic_0001>
module attributes {stable_mosaic.version = 11 : i64} {
  func.func @biattention_kernel(%arg0: i32, %arg1: memref<1x16x128xf32, #tpu.memory_space<vmem>>, %arg2: memref<1x32x128xf32, #tpu.memory_space<vmem>>, %arg3: memref<1x1x32xf32, #tpu.memory_space<vmem>>, %arg4: memref<1x128xf32, #tpu.memory_space<vmem>>, %arg5: memref<1x128xf32, #tpu.memory_space<vmem>>, %arg6: memref<1x128xf32, #tpu.memory_space<vmem>>, %arg7: memref<1x16x512xf32, #tpu.memory_space<vmem>>) attributes {dimension_semantics = [#tpu.dimension_semantics<parallel>], iteration_bounds = array<i64: 2>, scalar_prefetch = 0 : i64, scratch_operands = 0 : i64, tpu.core_type = #tpu.core_type<tc>, window_params = [{transform_indices = @transform_0, window_bounds = array<i64: 1, 16, 128>}, {transform_indices = @transform_1, window_bounds = array<i64: 1, 32, 128>}, {transform_indices = @transform_2, window_bounds = array<i64: 1, 1, 32>}, {pipeline_mode = #tpu.pipeline_mode<synchronous>, transform_indices = @transform_3, window_bounds = array<i64: 1, 128>}, {pipeline_mode = #tpu.pipeline_mode<synchronous>, transform_indices = @transform_4, window_bounds = array<i64: 1, 128>}, {pipeline_mode = #tpu.pipeline_mode<synchronous>, transform_indices = @transform_5, window_bounds = array<i64: 1, 128>}, {transform_indices = @transform_6, window_bounds = array<i64: 1, 16, 512>}]} {
    %c0 = arith.constant 0 : index
    %c0_0 = arith.constant 0 : index
    %c0_1 = arith.constant 0 : index
    %0 = vector.load %arg1[%c0, %c0_0, %c0_1] : memref<1x16x128xf32, #tpu.memory_space<vmem>>, vector<1x16x128xf32>
    %1 = vector.shape_cast %0 : vector<1x16x128xf32> to vector<16x128xf32>
    %c0_2 = arith.constant 0 : index
    %c0_3 = arith.constant 0 : index
    %c0_4 = arith.constant 0 : index
    %2 = vector.load %arg2[%c0_2, %c0_3, %c0_4] : memref<1x32x128xf32, #tpu.memory_space<vmem>>, vector<1x32x128xf32>
    %3 = vector.shape_cast %2 : vector<1x32x128xf32> to vector<32x128xf32>
    %c0_5 = arith.constant 0 : index
    %c0_6 = arith.constant 0 : index
    %c0_7 = arith.constant 0 : index
    %4 = vector.load %arg3[%c0_5, %c0_6, %c0_7] : memref<1x1x32xf32, #tpu.memory_space<vmem>>, vector<1x1x32xf32>
    %5 = vector.shape_cast %4 : vector<1x1x32xf32> to vector<1x32xf32>
    %c0_8 = arith.constant 0 : index
    %c0_9 = arith.constant 0 : index
    %6 = vector.load %arg4[%c0_8, %c0_9] : memref<1x128xf32, #tpu.memory_space<vmem>>, vector<1x128xf32>
    %c0_10 = arith.constant 0 : index
    %c0_11 = arith.constant 0 : index
    %7 = vector.load %arg5[%c0_10, %c0_11] : memref<1x128xf32, #tpu.memory_space<vmem>>, vector<1x128xf32>
    %c0_12 = arith.constant 0 : index
    %c0_13 = arith.constant 0 : index
    %8 = vector.load %arg6[%c0_12, %c0_13] : memref<1x128xf32, #tpu.memory_space<vmem>>, vector<1x128xf32>
    %9 = vector.broadcast %8 : vector<1x128xf32> to vector<16x128xf32>
    %10 = arith.mulf %1, %9 : vector<16x128xf32>
    %cst = arith.constant dense<0.000000e+00> : vector<16x32xf32>
    %11 = tpu.matmul %10, %3, %cst {dimension_numbers = #tpu.dot_dimension_numbers<[1], [1], [0], [0], [0, 0, 1, 0], [], []>} : vector<16x128xf32>, vector<32x128xf32>, vector<16x32xf32> -> vector<16x32xf32>
    %cst_14 = arith.constant dense<0.000000e+00> : vector<16x1xf32>
    %12 = tpu.matmul %1, %6, %cst_14 {dimension_numbers = #tpu.dot_dimension_numbers<[1], [1], [0], [0], [0, 0, 1, 0], [], []>} : vector<16x128xf32>, vector<1x128xf32>, vector<16x1xf32> -> vector<16x1xf32>
    %cst_15 = arith.constant dense<0.000000e+00> : vector<1x32xf32>
    %13 = tpu.matmul %7, %3, %cst_15 {dimension_numbers = #tpu.dot_dimension_numbers<[1], [1], [0], [0], [0, 0, 1, 0], [], []>} : vector<1x128xf32>, vector<32x128xf32>, vector<1x32xf32> -> vector<1x32xf32>
    %14 = vector.broadcast %12 : vector<16x1xf32> to vector<16x32xf32>
    %15 = arith.addf %11, %14 : vector<16x32xf32>
    %16 = vector.broadcast %13 : vector<1x32xf32> to vector<16x32xf32>
    %17 = arith.addf %15, %16 : vector<16x32xf32>
    %18 = vector.broadcast %5 : vector<1x32xf32> to vector<16x32xf32>
    %19 = arith.addf %17, %18 : vector<16x32xf32>
    %cst_16 = arith.constant dense<0xFF800000> : vector<16xf32>
    %20 = vector.multi_reduction <maximumf>, %19, %cst_16 [1] : vector<16x32xf32> to vector<16xf32>
    %21 = vector.shape_cast %20 : vector<16xf32> to vector<16x1xf32>
    %22 = vector.broadcast %21 : vector<16x1xf32> to vector<16x32xf32>
    %23 = arith.subf %19, %22 : vector<16x32xf32>
    %24 = math.exp %23 : vector<16x32xf32>
    %cst_17 = arith.constant dense<0.000000e+00> : vector<16xf32>
    %25 = vector.multi_reduction <add>, %24, %cst_17 [1] : vector<16x32xf32> to vector<16xf32>
    %26 = vector.shape_cast %25 : vector<16xf32> to vector<16x1xf32>
    %27 = tpu.reciprocal %26 : vector<16x1xf32> -> vector<16x1xf32>
    %28 = vector.broadcast %27 : vector<16x1xf32> to vector<16x32xf32>
    %29 = arith.mulf %24, %28 : vector<16x32xf32>
    %cst_18 = arith.constant dense<0.000000e+00> : vector<16x128xf32>
    %30 = tpu.matmul %29, %3, %cst_18 {dimension_numbers = #tpu.dot_dimension_numbers<[1], [0], [0], [1], [0, 0, 1, 1], [], []>} : vector<16x32xf32>, vector<32x128xf32>, vector<16x128xf32> -> vector<16x128xf32>
    %cst_19 = arith.constant dense<0xFF800000> : vector<1xf32>
    %31 = vector.multi_reduction <maximumf>, %21, %cst_19 [0] : vector<16x1xf32> to vector<1xf32>
    %32 = vector.shape_cast %31 : vector<1xf32> to vector<1x1xf32>
    %33 = vector.broadcast %32 : vector<1x1xf32> to vector<16x1xf32>
    %34 = arith.subf %21, %33 : vector<16x1xf32>
    %35 = math.exp %34 : vector<16x1xf32>
    %cst_20 = arith.constant dense<0.000000e+00> : vector<1xf32>
    %36 = vector.multi_reduction <add>, %35, %cst_20 [0] : vector<16x1xf32> to vector<1xf32>
    %37 = vector.shape_cast %36 : vector<1xf32> to vector<1x1xf32>
    %38 = tpu.reciprocal %37 : vector<1x1xf32> -> vector<1x1xf32>
    %39 = vector.broadcast %38 : vector<1x1xf32> to vector<16x1xf32>
    %40 = arith.mulf %35, %39 : vector<16x1xf32>
    %41 = vector.broadcast %40 : vector<16x1xf32> to vector<16x128xf32>
    %42 = arith.mulf %41, %1 : vector<16x128xf32>
    %cst_21 = arith.constant dense<0.000000e+00> : vector<128xf32>
    %43 = vector.multi_reduction <add>, %42, %cst_21 [0] : vector<16x128xf32> to vector<128xf32>
    %44 = vector.shape_cast %43 : vector<128xf32> to vector<1x128xf32>
    %c0_22 = arith.constant 0 : index
    %c0_23 = arith.constant 0 : index
    %c0_24 = arith.constant 0 : index
    %45 = vector.load %arg7[%c0_22, %c0_23, %c0_24] : memref<1x16x512xf32, #tpu.memory_space<vmem>>, vector<1x16x128xf32>
    %46 = vector.shape_cast %45 : vector<1x16x128xf32> to vector<16x128xf32>
    %47 = vector.shape_cast %1 : vector<16x128xf32> to vector<1x16x128xf32>
    tpu.vector_store %arg7[%c0_22, %c0_23, %c0_24], %47 {strides = array<i32>} : memref<1x16x512xf32, #tpu.memory_space<vmem>>, vector<1x16x128xf32>,
    %c0_25 = arith.constant 0 : index
    %c0_26 = arith.constant 0 : index
    %c128 = arith.constant 128 : index
    %48 = vector.load %arg7[%c0_25, %c0_26, %c128] : memref<1x16x512xf32, #tpu.memory_space<vmem>>, vector<1x16x128xf32>
    %49 = vector.shape_cast %48 : vector<1x16x128xf32> to vector<16x128xf32>
    %50 = vector.shape_cast %30 : vector<16x128xf32> to vector<1x16x128xf32>
    tpu.vector_store %arg7[%c0_25, %c0_26, %c128], %50 {strides = array<i32>} : memref<1x16x512xf32, #tpu.memory_space<vmem>>, vector<1x16x128xf32>,
    %51 = arith.mulf %1, %30 : vector<16x128xf32>
    %c0_27 = arith.constant 0 : index
    %c0_28 = arith.constant 0 : index
    %c256 = arith.constant 256 : index
    %52 = vector.load %arg7[%c0_27, %c0_28, %c256] : memref<1x16x512xf32, #tpu.memory_space<vmem>>, vector<1x16x128xf32>
    %53 = vector.shape_cast %52 : vector<1x16x128xf32> to vector<16x128xf32>
    %54 = vector.shape_cast %51 : vector<16x128xf32> to vector<1x16x128xf32>
    tpu.vector_store %arg7[%c0_27, %c0_28, %c256], %54 {strides = array<i32>} : memref<1x16x512xf32, #tpu.memory_space<vmem>>, vector<1x16x128xf32>,
    %55 = vector.broadcast %44 : vector<1x128xf32> to vector<16x128xf32>
    %56 = arith.mulf %55, %30 : vector<16x128xf32>
    %c0_29 = arith.constant 0 : index
    %c0_30 = arith.constant 0 : index
    %c384 = arith.constant 384 : index
    %57 = vector.load %arg7[%c0_29, %c0_30, %c384] : memref<1x16x512xf32, #tpu.memory_space<vmem>>, vector<1x16x128xf32>
    %58 = vector.shape_cast %57 : vector<1x16x128xf32> to vector<16x128xf32>
    %59 = vector.shape_cast %56 : vector<16x128xf32> to vector<1x16x128xf32>
    tpu.vector_store %arg7[%c0_29, %c0_30, %c384], %59 {strides = array<i32>} : memref<1x16x512xf32, #tpu.memory_space<vmem>>, vector<1x16x128xf32>,
    return
  }
  func.func @transform_0(%arg0: i32) -> (i32, i32, i32) {
    %c0_i32 = arith.constant 0 : i32
    %c0_i32_0 = arith.constant 0 : i32
    %c0_i32_1 = arith.constant 0 : i32
    return %arg0, %c0_i32, %c0_i32_0 : i32, i32, i32
  }
  func.func @transform_1(%arg0: i32) -> (i32, i32, i32) {
    %c0_i32 = arith.constant 0 : i32
    %c0_i32_0 = arith.constant 0 : i32
    %c0_i32_1 = arith.constant 0 : i32
    return %arg0, %c0_i32, %c0_i32_0 : i32, i32, i32
  }
  func.func @transform_2(%arg0: i32) -> (i32, i32, i32) {
    %c0_i32 = arith.constant 0 : i32
    %c0_i32_0 = arith.constant 0 : i32
    %c0_i32_1 = arith.constant 0 : i32
    return %arg0, %c0_i32, %c0_i32_0 : i32, i32, i32
  }
  func.func @transform_3(%arg0: i32) -> (i32, i32) {
    %c0_i32 = arith.constant 0 : i32
    %c0_i32_0 = arith.constant 0 : i32
    %c0_i32_1 = arith.constant 0 : i32
    return %c0_i32, %c0_i32_0 : i32, i32
  }
  func.func @transform_4(%arg0: i32) -> (i32, i32) {
    %c0_i32 = arith.constant 0 : i32
    %c0_i32_0 = arith.constant 0 : i32
    %c0_i32_1 = arith.constant 0 : i32
    return %c0_i32, %c0_i32_0 : i32, i32
  }
  func.func @transform_5(%arg0: i32) -> (i32, i32) {
    %c0_i32 = arith.constant 0 : i32
    %c0_i32_0 = arith.constant 0 : i32
    %c0_i32_1 = arith.constant 0 : i32
    return %c0_i32, %c0_i32_0 : i32, i32
  }
  func.func @transform_6(%arg0: i32) -> (i32, i32, i32) {
    %c0_i32 = arith.constant 0 : i32
    %c0_i32_0 = arith.constant 0 : i32
    %c0_i32_1 = arith.constant 0 : i32
    return %arg0, %c0_i32, %c0_i32_0 : i32, i32, i32
  }
}

</mosaic_0001>

<bundles_post_ra>
// kernel: tpu_custom_call.1
= control target key start
LH: loop header
LB: loop body
LE: loop exit
PB: predicated region body
PF: predicated region fallthrough
CT: control target
= control target key end

     0   :  { %s1391_s0 = inlined_call_operand.hbm [shape: f32[2,16,128], index: 0, kind: input, shape index: {}]   ;;  %s1392_s1 = inlined_call_operand.hbm [shape: f32[2,32,128], index: 1, kind: input, shape index: {}]   ;;  %s1393_s2 = inlined_call_operand.vmem [shape: f32[2,1,32], index: 2, kind: input, shape index: {}]   ;;  %s1394_s3 = inlined_call_operand.vmem [shape: f32[1,128], index: 3, kind: input, shape index: {}]   ;;  %s1395_s4 = inlined_call_operand.vmem [shape: f32[1,128], index: 4, kind: input, shape index: {}]   ;;  %s1396_s5 = inlined_call_operand.vmem [shape: f32[1,128], index: 5, kind: input, shape index: {}]   ;;  %s1397_s6 = inlined_call_operand.hbm [shape: f32[2,16,512], index: 6, kind: output, shape index: {}]  }
   0x1   :  { %1400 = sst [smem:[#allocation11_spill]] %s1391_s0 }
   0x2   :  { %11 = vsyncpa [#allocation3], 0 }
   0x3   :  { %13 = vsyncpa [#allocation3 + $0x1], 0 }
   0x4   :  { %14 = vsyncpa [#allocation6], 0 }
   0x5   :  { %16 = vsyncpa [#allocation6 + $0x1], 0 }
   0x6   :  { %17 = vsyncpa [#allocation4], 0 }
   0x7   :  { %19 = vsyncpa [#allocation4 + $0x1], 0  ;;  %s1127_s21 = smov 0   ;;  %s1129_s22 = smov 0  }
   0x8   :  { %s1131_s23 = smov 0   ;;  %s1133_s24 = smov 0  }
   0x9 LB: > { %s1148_s25 = sadd.s32 4294967295, %s1080_s24   ;;  %s780_s26 = sadd.s32 4294967294, %s1080_s24   ;;  %s1080_s24 = sphi %s1133_s24, %s1415_s24   ;;  %s1076_s23 = sphi %s1131_s23, %s1414_s23   ;;  %s1072_s22 = sphi %s1129_s22, %s1413_s22   ;;  %s1068_s21 = sphi %s1127_s21, %s1412_s21  }
   0xa   : > { %s1152_s27 = sadd.s32 1, %s1080_s24   ;;  %s32_s28 = sadd.s32 1, %s1076_s23 }
   0xb   : > { %s29_s29 = ssub.s32 %s1080_s24, %s1152_s27  ;;  %p39_p0 = scmp.ne.s32.totalorder %s1076_s23, %s1072_s22 }
   0xc   : > { %p30_p1 = scmp.eq.s32.totalorder %s29_s29, 0  ;;  %p40_p2 = scmp.eq.s32.totalorder %s1080_s24, 0 }
   0xd   : > { %p45_p3 = scmp.ne.s32.totalorder %s1072_s22, %s1068_s21  ;;  %p46_p4 = scmp.eq.s32.totalorder %s1148_s25, 0 }
   0xe   : > { %s1164_s30 = scalar_select %p30_p1, %s1076_s23, %s32_s28  }
   0xf   : > { %p1166_p5 = por %p40_p2, %p39_p0  ;;  %p1170_p6 = por %p46_p4, %p45_p3 }
  0x10   : > { %p184_p7 = scmp.eq.s32.totalorder %s1148_s25, 1  ;;  %p190_p8 = scmp.eq.s32.totalorder %s780_s26, 1 }
  0x11   : > { %s1402_s8 = scalar_select %p1170_p6, 1, 0 }
  0x12   : > { %p895_p10 = scmp.lt.s32.totalorder %s1080_s24, 2  ;;  %p1177_p11 = por %p184_p7, %p39_p0 }
  0x13   : > { %p1181_p12 = por %p190_p8, %p45_p3  ;;  %s1186_s11 = sand.u32 1, %s1076_s23  }
  0x14   : > { %s1403_s9 = scalar_select %p1177_p11, 1, 0 }
  0x15   : > { %s1404_s10 = scalar_select %p1181_p12, 1, 0 }
  0x16   : > { %s803_s12 = sshll.u32 %s1080_s24, 8  ;;  %s783_s13 = sshll.u32 %s1186_s11, 4 }
  0x17   : > { %s1405_s0 = sld [smem:[#allocation11_spill]]  ;;  %s223_s17 = scalar_lea.vmem [#allocation2], %s783_s13 }
  0x18   : > { %s230_s18 = sshll.u32 %s223_s17, 4  ;;  %p1197_p13 = pnand %p895_p10, %p1166_p5  ;;  %s1201_s18 = int_to_ptr.vmem [resolvable:$true] %s230_s18 }
  0x19   : > { %s220_s20 = scalar_lea.sflag [#allocation3], %s1186_s11 }
  0x1a   : > { %p952_p1 = pneg %p1197_p13 }
  0x1d   : > { %s1193_s16 = scalar_lea.hbm %s1405_s0, %s803_s12  ;;  %s955_s7 = scalar_lea.hbm %s1405_s0, 512 }
  0x1e   : > { %s950_s26 = scalar_lea.hbm %s1193_s16, 256  ;;  %p956_p4 = scmp.lt.u32.totalorder %s1193_s16, %s1405_s0 }
  0x1f   : > { %p951_p0 = scmp.ne.s32.totalorder %s1193_s16, %s950_s26  ;;  %p957_p5 = scmp.lt.u32.totalorder %s955_s7, %s950_s26 }
  0x20   : > { %p959_p8 = scmp.lt.u32.totalorder %s950_s26, %s1193_s16 }
  0x21   : > { %p953_p2 = pnand %p952_p1, %p951_p0  ;;  %p958_p7 = por %p957_p5, %p956_p4 }
  0x23   : > { %p954_p3 = pneg %p953_p2  ;;  %p960_p10 = por %p959_p8, %p958_p7 }
  0x25   : > { %p961_p9 = pnand %p960_p10, %p954_p3 }
  0x27   : > { %964 = shalt.err (!%p961_p9)
}
  0x28   : > { %s965_s14 = scalar_lea.vmem %s1201_s18, 256  ;;  %s1082_s15 = smov [#allocation2]  }
  0x29   : > { %p966_p0 = scmp.ne.s32.totalorder %s1201_s18, %s965_s14  ;;  %s970_s17 = sshll.u32 %s1082_s15, 4  ;;  %s971_s17 = int_to_ptr.vmem [resolvable:$false] %s970_s17 }
  0x2a   : > { %s972_s28 = scalar_lea.vmem %s971_s17, 512  ;;  %p973_p11 = scmp.lt.s32.totalorder %s1201_s18, %s971_s17 }
  0x2b   : > { %p968_p2 = pnand %p966_p0, %p952_p1  ;;  %p974_p4 = scmp.lt.s32.totalorder %s972_s28, %s965_s14 }
  0x2d   : > { %p969_p12 = pneg %p968_p2  ;;  %p975_p5 = por %p974_p4, %p973_p11 }
  0x2f   : > { %p976_p7 = pnand %p975_p5, %p969_p12 }
  0x31   : > { %979 = shalt.err (!%p976_p7)
}
  0x32   : > { %s1083_s26 = smov 128   ;;  %s1084_s29 = smov 8  }
  0x33   : > { %887 = dma.hbm_to_vmem [thread:$0]  (!%p1197_p13), %s1193_s16, 256, %s1201_s18, %s220_s20, %s1083_s26, %s1083_s26, %s1084_s29  }
  0x34   : > { %p789_p9 = scmp.ge.s32.totalorder %s1080_s24, 1  ;;  %p265_p11 = scmp.lt.s32.totalorder %s1080_s24, 3 }
  0x35   : > { %s786_s7 = sshll.u32 %s1186_s11, 5  ;;  %s804_s13 = sshll.u32 %s1080_s24, 9 }
  0x36   : > { %p1237_p12 = pnand %p789_p9, %p265_p11  ;;  %s244_s14 = scalar_lea.vmem [#allocation5], %s786_s7 }
  0x37   : > { %s251_s15 = sshll.u32 %s244_s14, 4  ;;  %s1245_s0 = scalar_lea.hbm %s1392_s1, %s804_s13  ;;  %s1247_s15 = int_to_ptr.vmem [resolvable:$true] %s251_s15 }
  0x38   : > { %s241_s16 = scalar_lea.sflag [#allocation6], %s1186_s11  ;;  %s980_s18 = scalar_lea.hbm %s1245_s0, 512 }
  0x39   : > { %p981_p3 = scmp.ne.s32.totalorder %s1245_s0, %s980_s18  ;;  %s985_s14 = scalar_lea.hbm %s1392_s1, 1024 }
  0x3a   : > { %p986_p0 = scmp.lt.u32.totalorder %s1245_s0, %s1392_s1  ;;  %p987_p2 = scmp.lt.u32.totalorder %s985_s14, %s980_s18 }
  0x3b   : > { %p983_p8 = pnand %p981_p3, %p952_p1  ;;  %p989_p5 = scmp.lt.u32.totalorder %s980_s18, %s1245_s0 }
  0x3c   : > { %p988_p4 = por %p987_p2, %p986_p0 }
  0x3d   : > { %p984_p10 = pneg %p983_p8 }
  0x3e   : > { %p990_p7 = por %p989_p5, %p988_p4 }
  0x40   : > { %p991_p9 = pnand %p990_p7, %p984_p10 }
  0x42   : > { %994 = shalt.err (!%p991_p9)
}
  0x43   : > { %s995_s28 = scalar_lea.vmem %s1247_s15, 512  ;;  %s1085_s20 = smov [#allocation5]  }
  0x44   : > { %p996_p11 = scmp.ne.s32.totalorder %s1247_s15, %s995_s28  ;;  %s1000_s7 = sshll.u32 %s1085_s20, 4  ;;  %s1001_s7 = int_to_ptr.vmem [resolvable:$false] %s1000_s7 }
  0x45   : > { %s1002_s17 = scalar_lea.vmem %s1001_s7, 1024  ;;  %p1003_p6 = scmp.lt.s32.totalorder %s1247_s15, %s1001_s7 }
  0x46   : > { %p998_p3 = pnand %p996_p11, %p952_p1  ;;  %p1004_p0 = scmp.lt.s32.totalorder %s1002_s17, %s995_s28 }
  0x48   : > { %p999_p8 = pneg %p998_p3  ;;  %p1005_p2 = por %p1004_p0, %p1003_p6 }
  0x4a   : > { %p1006_p4 = pnand %p1005_p2, %p999_p8 }
  0x4c   : > { %1009 = shalt.err (!%p1006_p4)
}
  0x4d   : > { %890 = dma.hbm_to_vmem [thread:$0]  (!%p1197_p13), %s1245_s0, 512, %s1247_s15, %s241_s16, %s1083_s26, %s1083_s26, %s1084_s29  }
  0x4e   : > { %269 = sbr.rel (%p1237_p12) target bundleno = 876 (0x36c), region = 44  ;;  %s1281_s18 = sand.u32 (!%p1237_p12), 1, %s1072_s22  }
  0x4f   : > { %s790_s14 = sshll.u32 (!%p1237_p12), %s1281_s18, 4  ;;  %s272_s13 = scalar_lea.sflag (!%p1237_p12), [#allocation3], %s1281_s18 }
  0x50   : > { %s275_s19 = scalar_lea.vmem (!%p1237_p12), [#allocation2], %s790_s14  ;;  %p1408_p6 = scmp.ne.s32.totalorder (!%p1237_p12), %s1402_s8, 0 }
  0x55   : > { %1055 = dma.done.wait (%p1408_p6), %s272_s13, 256  }
  0x56   : > { %1057 = vsyncadd (%p1408_p6), %s272_s13, 4294967040  ;;  %s791_s0 = sshll.u32 %s1281_s18, 5  ;;  %s281_s11 = scalar_lea.sflag [#allocation6], %s1281_s18 }
  0x57   : > { %s284_s26 = scalar_lea.vmem [#allocation5], %s791_s0 }
  0x58   : > { %1059 = dma.done.wait (%p1408_p6), %s281_s11, 512  }
  0x59   : > { %1061 = vsyncadd (%p1408_p6), %s281_s11, 4294966784  ;;  %v1086_v0 = vmov 0.0|0.0   ;;  %vm1087_vm0 = vmmov 0   ;;  %v1088_v1 = vmov 0.0   ;;  %s792_s29 = sshll.u32 %s1281_s18, 6  ;;  %v326_v2 = vld [vmem:[%s284_s26] sm:$0xff]  ;;  %v499_v17 = vlaneseq }
  0x5a   : > { %856 = vmatprep.subr.bf16.mxu0 %v1086_v0  ;;  %831 = vmatprep.mubr.msk.f32.mxu0 %vm1087_vm0, %v1088_v1  ;;  %v327_v3 = vld [vmem:[%s284_s26 + $0x8] sm:$0xff]  ;;  %v328_v4 = vld [vmem:[%s284_s26 + $0x10] sm:$0xff]  ;;  %v329_v6 = vld [vmem:[%s284_s26 + $0x18] sm:$0xff]  ;;  %s1303_s15 = scalar_lea.vmem [#allocation7], %s792_s29  ;;  %p321_p13 = scmp.lt.s32.totalorder %s1148_s25, 1  ;;  %vm513_vm1 = vcmask 261120  }
  0x5b   : > { %v857_v5 = vpack.c.bf16 %v327_v3, %v326_v2  ;;  %v1296_v7 = vld [vmem:[%s275_s19] sm:$0xff]  ;;  %v1298_v8 = vld [vmem:[%s275_s19 + $0x8] sm:$0xff]  ;;  %v860_v9 = vpack.c.bf16 %v329_v6, %v328_v4  ;;  %v500_v19 = vshrl.u32 %v499_v17, 7  ;;  %s805_s0 = sshll.u32 %s1148_s25, 10  ;;  %s675_s11 = sshll.u32 %s1303_s15, 4  ;;  %s1341_s11 = int_to_ptr.vmem [resolvable:$true] %s675_s11 }
  0x5c   : > { %v793_v10 = vld [vmem:[%s1396_s5] ss:$0 sm:$0xff]  ;;  %649 = vst [vmem:[%s1303_s15] sm:$0xff] %v1296_v7  ;;  %650 = vst [vmem:[%s1303_s15 + $0x20] sm:$0xff] %v1298_v8  ;;  %s322_s17 = scalar_select %p321_p13, %s1148_s25, 1 }
  0x5d   : > { %v794_v11 = vld [vmem:[%s1394_s3] ss:$0 sm:$0xff]  ;;  %863 = vmatprep.subr.bf16.mxu1 %v857_v5  ;;  %858 = vmatpush3.bf16.xpose.msra.mxu0 %v857_v5  ;;  %v340_v12 = vmul.f32 %v793_v10, %v1296_v7  ;;  %v341_v15 = vmul.f32 %v793_v10, %v1298_v8  ;;  %v501_v20 = vsub.s32 0, %v500_v19  ;;  %s1339_s12 = scalar_lea.hbm %s1397_s6, %s805_s0  ;;  %s662_s25 = scalar_lea.sflag [#allocation4], %s1281_s18 }
  0x5e   : > { %v348_v13 = vmul.f32 %v794_v11, %v1296_v7  ;;  %865 = vmatpush3.bf16.xpose.msra.mxu1 %v857_v5  ;;  %859 = vmatprep.subr.bf16.mxu0 %v1086_v0  ;;  %v349_v14 = vmul.f32 %v794_v11, %v1298_v8  ;;  %v332_v16 = vld [vmem:[%s1395_s4] sm:$0x1]  ;;  %s323_s19 = scalar_lea.vmem %s1393_s2, %s322_s17  ;;  %s1010_s8 = scalar_lea.vmem %s1341_s11, 1024 }
  0x5f   : > { %867 = vmatprep.subr.bf16.mxu1 %v860_v9  ;;  %842 = vmatprep.mubr.f32.mxu1 %v340_v12  ;;  %v795_v30 = vld [vmem:[%s323_s19] ss:$0 sm:$0xff]  ;;  %p1011_p1 = scmp.ne.s32.totalorder %s1341_s11, %s1010_s8  ;;  %p1409_p12 = scmp.ne.s32.totalorder %s1403_s9, 0 }
  0x60   : > { %350 = vadd.xlane.f32.xlu0 %v348_v13  ;;  %s1089_s16 = smov [#allocation7]  }
  0x61   : > { %p1012_p10 = pnand %p1011_p1, %p1409_p12  ;;  %s1014_s28 = sshll.u32 %s1089_s16, 4  ;;  %s1015_s28 = int_to_ptr.vmem [resolvable:$false] %s1014_s28 }
  0x62   : > { %s1016_s20 = scalar_lea.vmem %s1015_s28, 2048  ;;  %p1017_p7 = scmp.lt.s32.totalorder %s1341_s11, %s1015_s28 }
  0x63   : > { %p1013_p5 = pneg %p1012_p10  ;;  %p1018_p9 = scmp.lt.s32.totalorder %s1016_s20, %s1010_s8 }
  0x64   : > { %352 = vadd.xlane.f32.xlu0 %v349_v14 }
  0x65   : > { %861 = vmatpush3.bf16.xpose.msra.mxu0 %v860_v9  ;;  %p1019_p11 = por %p1018_p9, %p1017_p7 }
  0x66   : > { %869 = vmatpush3.bf16.xpose.msra.mxu1 %v860_v9  ;;  %871 = vmatprep.subr.bf16.mxu0 %v857_v5 }
  0x67   : > { %p1020_p3 = pnand %p1019_p11, %p1013_p5 }
  0x6c   : > { %832 = vmatmul.mubr.f32.vlgmr.msra.gmra.mrb[0].mxu0 %v332_v16 }
  0x6d   : > { %843 = vmatmul.mubr.f32.vlgmr.msra.gmra.mrb[0].mxu1 %v341_v15  ;;  %873 = vmatpush3.bf16.msra.mxu0 %v857_v5 }
  0x6e   : > { %875 = vmatprep.subr.bf16.mxu0 %v860_v9 }
  0x71   : > { %877 = vmatpush3.bf16.msra.mxu0 %v860_v9 }
  0xed   : > { %v351_v18 = vpop.xlane.xlu0 %350 }
  0xf1   : > { %v353_v21 = vpop.xlane.xlu0 %352 }
 0x13f   : > { %v420_v22 = vpop.f32.mrb[0].mxu0 }
 0x140   : > { %v502_v23 = vrot.slane %v420_v22, %v501_v20  ;;  %v844_v24 = vpop.f32.mrb[0].mxu1  ;;  %v833_v25 = vpop.f32.mrb[1].mxu0 }
 0x141   : > { %v496_v26 = vadd.f32 %v844_v24, %v353_v21  ;;  %v490_v27 = vpop.f32.mrb[1].mxu1 }
 0x142   : > { %v491_v28 = vadd.f32 %v490_v27, %v351_v18 }
 0x143   : > { %v504_v29 = vadd.f32 %v502_v23, %v496_v26 }
 0x144   : > { %v503_v31 = vadd.f32 %v502_v23, %v491_v28 }
 0x145   : > { %v512_v34 = vadd.f32 %v795_v30, %v504_v29 }
 0x146   : > { %v511_v32 = vadd.f32 %v795_v30, %v503_v31 }
 0x147   : > { %v517_v35 = vsel %vm513_vm1, %v512_v34, -inf }
 0x148   : > { %v514_v33 = vsel %vm513_vm1, %v511_v32, -inf }
 0x149   : > { %515 = vmax.xlane.f32.xlu1 %v514_v33 }
 0x14d   : > { %518 = vmax.xlane.f32.xlu1 %v517_v35 }
 0x1d6   : > { %v516_v36 = vpop.xlane.xlu1 %515 }
 0x1d7   : > { %v520_v37 = vsub.f32 %v511_v32, %v516_v36 }
 0x1d9   : > { %v522_v38 = vmul.f32 1.442695, %v520_v37 }
 0x1da   : > { %v519_v39 = vpop.xlane.xlu1 %518 }
 0x1db   : > { %936 = vpow2.f32 %v522_v38  ;;  %v521_v40 = vsub.f32 %v512_v34, %v519_v39  ;;  %v617_v52 = vmax.f32 %v516_v36, %v519_v39 }
 0x1dd   : > { %v524_v41 = vmul.f32 1.442695, %v521_v40  ;;  %v618_v53 = vrot.slane %v617_v52, 4 }
 0x1df   : > { %938 = vpow2.f32 %v524_v41  ;;  %v619_v54 = vmax.f32 %v617_v52, %v618_v53 }
 0x1e1   : > { %v620_v55 = vrot.slane %v619_v54, 2 }
 0x1e3   : > { %v621_v56 = vmax.f32 %v619_v54, %v620_v55 }
 0x1e5   : > { %v937_v42 = vpop.eup %936  ;;  %v622_v57 = vrot.slane %v621_v56, 1 }
 0x1e6   : > { %v526_v43 = vsel %vm513_vm1, %v937_v42, 0.0 }
 0x1e7   : > { %527 = vadd.xlane.f32.xlu0 %v526_v43  ;;  %v623_v58 = vmax.f32 %v621_v56, %v622_v57 }
 0x1e9   : > { %v939_v44 = vpop.eup %938  ;;  %v624_v59 = vsub.f32 %v516_v36, %v623_v58  ;;  %v625_v60 = vsub.f32 %v519_v39, %v623_v58 }
 0x1ea   : > { %v529_v45 = vsel %vm513_vm1, %v939_v44, 0.0 }
 0x1eb   : > { %530 = vadd.xlane.f32.xlu1 %v529_v45  ;;  %v626_v61 = vmul.f32 1.442695, %v624_v59  ;;  %v628_v62 = vmul.f32 1.442695, %v625_v60 }
 0x274   : > { %v528_v46 = vpop.xlane.xlu0 %527 }
 0x275   : > { %940 = vrcp.f32 %v528_v46 }
 0x278   : > { %v531_v47 = vpop.xlane.xlu1 %530 }
 0x279   : > { %942 = vrcp.f32 %v531_v47 }
 0x27a   : > { %944 = vpow2.f32 %v626_v61 }
 0x27b   : > { %946 = vpow2.f32 %v628_v62 }
 0x27f   : > { %v941_v48 = vpop.eup %940 }
 0x280   : > { %v534_v49 = vmul.f32 %v941_v48, %v937_v42 }
 0x282   : > { %853 = vmatprep.mubr.msk.f32.mxu0 %vm513_vm1, %v534_v49 }
 0x283   : > { %v943_v50 = vpop.eup %942 }
 0x284   : > { %v535_v51 = vmul.f32 %v943_v50, %v939_v44  ;;  %v945_v63 = vpop.eup %944 }
 0x285   : > { %v947_v0 = vpop.eup %946 }
 0x286   : > { %854 = vmatmul.mubr.msk.f32.vlgmr.msra.gmra.mrb[2].mxu0 %vm513_vm1, %v535_v51  ;;  %v630_v1 = vadd.f32 %v947_v0, %v945_v63 }
 0x288   : > { %v631_v2 = vrot.slane %v630_v1, 4 }
 0x28a   : > { %v632_v3 = vadd.f32 %v631_v2, %v630_v1 }
 0x28c   : > { %v633_v4 = vrot.slane %v632_v3, 2 }
 0x28e   : > { %v634_v5 = vadd.f32 %v633_v4, %v632_v3 }
 0x290   : > { %v635_v6 = vrot.slane %v634_v5, 1 }
 0x292   : > { %v636_v9 = vadd.f32 %v635_v6, %v634_v5 }
 0x294   : > { %948 = vrcp.f32 %v636_v9 }
 0x29e   : > { %v949_v10 = vpop.eup %948 }
 0x29f   : > { %v638_v11 = vmul.f32 %v949_v10, %v945_v63  ;;  %v639_v12 = vmul.f32 %v949_v10, %v947_v0 }
 0x2a1   : > { %v640_v13 = vmul.f32 %v638_v11, %v1296_v7  ;;  %v641_v14 = vmul.f32 %v639_v12, %v1298_v8 }
 0x2a3   : > { %v642_v15 = vadd.f32 %v641_v14, %v640_v13 }
 0x2a5   : > { %v643_v16 = vrot.slane %v642_v15, 4 }
 0x2a7   : > { %v644_v17 = vadd.f32 %v643_v16, %v642_v15 }
 0x2a9   : > { %v645_v18 = vrot.slane %v644_v17, 2 }
 0x2ab   : > { %v646_v19 = vadd.f32 %v645_v18, %v644_v17 }
 0x2ad   : > { %v647_v20 = vrot.slane %v646_v19, 1 }
 0x2af   : > { %v648_v21 = vadd.f32 %v647_v20, %v646_v19 }
 0x359   : > { %v855_v22 = vpop.f32.mrb[2].mxu0 }
 0x35a   : > { %652 = vst [vmem:[%s1303_s15 + $0x28] sm:$0xff] %v855_v22  ;;  %v654_v23 = vmul.f32 %v855_v22, %v1298_v8  ;;  %v658_v24 = vmul.f32 %v855_v22, %v648_v21  ;;  %v608_v25 = vpop.f32.mrb[3].mxu0 }
 0x35b   : > { %651 = vst [vmem:[%s1303_s15 + $0x8] sm:$0xff] %v608_v25  ;;  %v653_v26 = vmul.f32 %v608_v25, %v1296_v7  ;;  %v657_v27 = vmul.f32 %v648_v21, %v608_v25 }
 0x35c   : > { %656 = vst [vmem:[%s1303_s15 + $0x30] sm:$0xff] %v654_v23  ;;  %660 = vst [vmem:[%s1303_s15 + $0x38] sm:$0xff] %v658_v24 }
 0x35d   : > { %655 = vst [vmem:[%s1303_s15 + $0x10] sm:$0xff] %v653_v26  ;;  %659 = vst [vmem:[%s1303_s15 + $0x18] sm:$0xff] %v657_v27 }
 0x35e   : > { %1023 = shalt.err (!%p1020_p3)
}
 0x35f   : > { %s1024_s15 = scalar_lea.hbm %s1339_s12, 1024  ;;  %s1028_s14 = scalar_lea.hbm %s1397_s6, 2048 }
 0x360   : > { %p1025_p8 = scmp.ne.s32.totalorder %s1339_s12, %s1024_s15  ;;  %p1029_p4 = scmp.lt.u32.totalorder %s1339_s12, %s1397_s6 }
 0x361   : > { %p1030_p6 = scmp.lt.u32.totalorder %s1028_s14, %s1024_s15  ;;  %p1032_p1 = scmp.lt.u32.totalorder %s1024_s15, %s1339_s12 }
 0x362   : > { %p1026_p0 = pnand %p1025_p8, %p1409_p12 }
 0x363   : > { %p1031_p13 = por %p1030_p6, %p1029_p4 }
 0x364   : > { %p1027_p2 = pneg %p1026_p0 }
 0x365   : > { %p1033_p10 = por %p1032_p1, %p1031_p13 }
 0x367   : > { %p1034_p5 = pnand %p1033_p10, %p1027_p2 }
 0x369   : > { %1037 = shalt.err (!%p1034_p5)
}
 0x36a   : > { %s1090_s0 = smov 512   ;;  %s1091_s26 = smov 32  }
 0x36b   : > { %882 = dma.vmem_to_hbm [thread:$0]  (%p1409_p12), %s1341_s11, 1024, %s1339_s12, %s662_s25, %s1090_s0, %s1090_s0, %s1091_s26  }
 0x36c PF: > { %s690_s29 = sand.u32 1, %s1068_s21   ;;  %p1410_p7 = scmp.ne.s32.totalorder %s1404_s10, 0 }
 0x36d   : > { %p1411_p9 = scmp.ge.s32.totalorder %s1080_s24, 2  ;;  %s691_s8 = scalar_lea.sflag [#allocation4], %s690_s29 }
 0x36f   : > { %p892_p11 = pnand %p1411_p9, %p1410_p7 }
 0x371   : > { %1063 = dma.done.wait (!%p892_p11), %s691_s8, 1024  }
 0x372   : > { %1065 = vsyncadd (!%p892_p11), %s691_s8, 4294966272  ;;  %p22_p3 = scmp.ge.s32.totalorder %s1152_s27, 4   ;;  %s1412_s21 = smov %s1072_s22 }
 0x373   : > { %s1413_s22 = smov %s1076_s23  ;;  %s1414_s23 = smov %s1164_s30 }
 0x374   : > { %s1415_s24 = smov %s1152_s27  ;;  %24 = sbr.rel (!%p22_p3) target bundleno = 9 (0x9), region = 105 }
 0x37b   :  { %696 = vsyncpa [#allocation3], 1 }
 0x37c   :  { %698 = vsyncpa [#allocation3 + $0x1], 1 }
 0x37d   :  { %699 = vsyncpa [#allocation6], 1 }
 0x37e   :  { %701 = vsyncpa [#allocation6 + $0x1], 1 }
 0x37f   :  { %702 = vsyncpa [#allocation4], 1 }
 0x380   :  { %704 = vsyncpa [#allocation4 + $0x1], 1 }

</bundles_post_ra>
